<compile_context>
chip_gen: v6e
topology: v6e:2x2x1
jax: 0.10.0
libtpu: 0.0.40
codegen_flags: <defaults>
</compile_context>

<pallas_src>
import functools

import numpy as np
import jax
import jax.numpy as jnp
from jax.experimental import pallas as pl
from jax.experimental.pallas import tpu as pltpu


def _round_up(x, m):
    return ((x + m - 1) // m) * m


def _cdiv(a, b):
    return -(-a // b)


def _proto_ce_kernel(q_ref, p_ref, psq_ref, tgt_ref, nll_ref, corr_ref, *,
                     n_valid_rows):
    i = pl.program_id(0)

    q = q_ref[...]        # (tnq, D)   query tile (queries on sublanes, D on lanes)
    p = p_ref[...]        # (Cpad, D)  2 * prototypes, zero rows on padding (resident)
    psq = psq_ref[...]    # (Cpad, 1)  ||p_c||^2 f32, +1e30 on padded class rows
    tgt = tgt_ref[...]    # (1, tnq)   int32 target class per query

    c_pad = p.shape[0]
    tnq = q.shape[0]

    # logits[c, j] = 2<p_c, q_j> - ||p_c||^2  ==  -||q_j - p_c||^2 up to a per-query
    # shift.  Classes land on sublanes, queries on lanes.  Padded class rows come out
    # at ~-1e30 automatically (p row = 0, psq = 1e30) -> no in-kernel class mask.
    qp = jax.lax.dot_general(p, q, (((1,), (1,)), ((), ())),
                             preferred_element_type=jnp.float32)      # (Cpad, tnq)
    logits = qp - psq

    cls = jax.lax.broadcasted_iota(jnp.int32, (c_pad, tnq), 0)

    # log-softmax pieces over the (small) class/sublane axis; log_p never materialized.
    m = jnp.max(logits, axis=0, keepdims=True)                        # (1, tnq)
    z = jnp.exp(logits - m)                                           # (Cpad, tnq) EUP
    lse = jnp.log(jnp.sum(z, axis=0, keepdims=True)) + m              # (1, tnq)

    onehot = cls == tgt                                               # (Cpad, tnq)
    picked = jnp.sum(jnp.where(onehot, logits, 0.0), axis=0, keepdims=True)
    nll = lse - picked                                                # (1, tnq)

    # argmax over classes (first-max-index tie-break); argmax is shift-invariant so it
    # runs on `logits` and reuses `m` instead of a second max reduction over log_p.
    cand = jnp.where(logits == m, cls, c_pad)
    y_hat = jnp.min(cand, axis=0, keepdims=True)                      # (1, tnq)
    correct = (y_hat == tgt).astype(jnp.float32)

    # Ragged last tile: query lanes past n_valid_rows hold garbage (possibly NaN/Inf),
    # so mask with jnp.where (select), never multiply.
    qidx = jax.lax.broadcasted_iota(jnp.int32, (1, tnq), 1) + i * tnq
    valid = qidx < n_valid_rows
    nll_ref[...] = jnp.where(valid, nll, 0.0).reshape(nll_ref.shape)
    corr_ref[...] = jnp.where(valid, correct, 0.0).reshape(corr_ref.shape)


@functools.partial(jax.jit, static_argnames=("block_rows", "use_bf16_matmul"))
def _proto_ce_pallas(query, protos, tgt_inds, *, block_rows=512,
                     use_bf16_matmul=False):
    """query: (Nq, D) f32, protos: (C, D) f32, tgt_inds: (Nq,) int32."""
    nq, d = query.shape
    c = protos.shape[0]

    # Class axis lives on sublanes -> pad only the tiny prototype matrix to 8.
    c_pad = _round_up(c, 8)

    # Query tiling: no wrapper pad of the (Nq, D) query stream (its HBM read IS the
    # dominant traffic); the grid is ragged and the kernel masks the last tile.
    # Guarantee >= 2 tiles when possible so both v7x TensorCores get work.
    if nq < 256:
        tnq, n_tiles = nq, 1
    else:
        n_tiles_target = max(2, _cdiv(nq, block_rows))
        tnq = _round_up(_cdiv(nq, n_tiles_target), 128)
        n_tiles = _cdiv(nq, tnq)

    mm_dtype = jnp.bfloat16 if use_bf16_matmul else jnp.float32
    q_mm = query.astype(mm_dtype)

    protos = protos.astype(jnp.float32)
    p_pad = jnp.pad(protos, ((0, c_pad - c), (0, 0)))                  # (Cpad, D)
    # Factor of 2 folded into the prototype operand (exact, power of 2); psq stays f32
    # and padded class rows get +1e30 so their logits are ~-1e30 with no kernel mask.
    p_mm = (2.0 * p_pad).astype(mm_dtype)
    valid_cls = (jnp.arange(c_pad, dtype=jnp.int32) < c)[:, None]
    psq = jnp.where(valid_cls,
                    jnp.sum(p_pad * p_pad, axis=1, keepdims=True),
                    jnp.float32(1e30)).astype(jnp.float32)             # (Cpad, 1)

    tgt = tgt_inds.astype(jnp.int32).reshape(1, nq)

    # VMEM budget: double-buffered q/tgt/output tiles + double-buffered resident
    # prototypes/psq + live (Cpad, tnq) f32 intermediates; clamp to 3/4 of physical.
    itemsize = jnp.dtype(mm_dtype).itemsize
    d_l = _round_up(d, 128)
    tnq_s = _round_up(tnq, 8)
    tnq_l = _round_up(tnq, 128)
    vmem_bytes = (2 * tnq_s * d_l * itemsize          # q tiles (double-buffered)
                  + 2 * c_pad * d_l * itemsize        # prototypes (resident, 2 bufs)
                  + 2 * c_pad * 128 * 4               # psq (lane padded)
                  + 2 * 8 * tnq_l * 4                 # tgt tile (int32, sublane padded)
                  + 2 * 2 * 8 * tnq_l * 4             # two per-query outputs
                  + 6 * c_pad * tnq_l * 4)            # kernel intermediates
    try:
        vmem_cap = int(pltpu.get_tpu_info().vmem_capacity_bytes)
    except Exception:                                  # fallback: v7x physical VMEM
        vmem_cap = 64 << 20
    vmem_limit = int(min(max(2 * vmem_bytes, 4 << 20), (3 * vmem_cap) // 4))

    kernel = functools.partial(_proto_ce_kernel, n_valid_rows=nq)

    nll, corr = pl.pallas_call(
        kernel,
        out_shape=(jax.ShapeDtypeStruct((n_tiles, 1, tnq), jnp.float32),
                   jax.ShapeDtypeStruct((n_tiles, 1, tnq), jnp.float32)),
        grid=(n_tiles,),
        in_specs=[
            pl.BlockSpec((tnq, d), lambda i: (i, 0)),        # query tile
            pl.BlockSpec((c_pad, d), lambda i: (0, 0)),      # 2*prototypes (resident)
            pl.BlockSpec((c_pad, 1), lambda i: (0, 0)),      # ||p||^2 col (resident)
            pl.BlockSpec((1, tnq), lambda i: (0, i)),        # target indices tile
        ],
        out_specs=(pl.BlockSpec((1, 1, tnq), lambda i: (i, 0, 0)),
                   pl.BlockSpec((1, 1, tnq), lambda i: (i, 0, 0))),
        compiler_params=pltpu.CompilerParams(
            dimension_semantics=("parallel",),
            vmem_limit_bytes=vmem_limit,
        ),
    )(q_mm, p_mm, psq, tgt)

    inv_nq = jnp.float32(1.0 / nq)
    loss = jnp.sum(nll) * inv_nq          # invalid lanes were zeroed in-kernel
    acc = jnp.sum(corr) * inv_nq
    return loss, acc


def _episode_split(inp, target, n_support):
    """Host-side index bookkeeping (torch.unique semantics), device-side gathers.

    The class grouping / support-query split is data-dependent (output shapes depend
    on label values), so the index computation stays in numpy; the gathers and the
    prototype mean run on-device as a single take + reshape-mean.
    """
    target_np = np.asarray(target)
    classes = np.unique(target_np)                       # sorted, like torch.unique
    n_classes = len(classes)
    n_query = int((target_np == classes[0]).sum()) - n_support

    support_idx = np.concatenate(
        [np.nonzero(target_np == c)[0][:n_support] for c in classes])
    query_idx = np.concatenate(
        [np.nonzero(target_np == c)[0][n_support:] for c in classes])

    inp = jnp.asarray(inp, dtype=jnp.float32)
    support = inp[jnp.asarray(support_idx)]                              # (C*n_s, D)
    prototypes = support.reshape(n_classes, n_support, -1).mean(axis=1)  # (C, D)
    query = inp[jnp.asarray(query_idx)]                                  # (C*n_q, D)
    target_inds = jnp.asarray(
        np.repeat(np.arange(n_classes), n_query).astype(np.int32))       # (C*n_q,)
    return query, prototypes, target_inds


class CrossEntropyLoss:
    """JAX/Pallas port of the prototypical CrossEntropyLoss module."""

    def __init__(self, n_support):
        self.n_support = n_support

    def __call__(self, inp, target):
        return self.crossentropy_loss(inp, target, self.n_support)

    @staticmethod
    def crossentropy_loss(inp, target, n_support, use_bf16_matmul=False):
        query, protos, tgt = _episode_split(inp, target, n_support)
        return _proto_ce_pallas(query, protos, tgt,
                                use_bf16_matmul=use_bf16_matmul)


def _reference_loss(inp, target, n_support):
    """Pure-JAX reference of the same forward pass (for correctness check)."""
    query, protos, tgt = _episode_split(inp, target, n_support)
    d = jnp.sum((query[:, None, :] - protos[None, :, :]) ** 2, axis=2)
    log_p = jax.nn.log_softmax(-d, axis=1)
    loss = -jnp.mean(log_p[jnp.arange(query.shape[0]), tgt])
    acc = jnp.mean((jnp.argmax(log_p, axis=1) == tgt).astype(jnp.float32))
    return loss, acc


if __name__ == "__main__":
    key = jax.random.PRNGKey(0)
    n_classes, n_support, n_query, hidden = 4, 2, 3, 32
    n_per_class = n_support + n_query
    n_total = n_classes * n_per_class                    # 20 samples

    # Deterministic synthetic episode: labels {1,3,5,7}, shuffled order.
    class_labels = np.array([3, 7, 1, 5], dtype=np.int32)
    target_np = np.repeat(class_labels, n_per_class)
    perm = np.asarray(jax.random.permutation(jax.random.fold_in(key, 1), n_total))
    target_np = target_np[perm]

    x = jax.random.normal(jax.random.fold_in(key, 2), (n_total, hidden),
                          dtype=jnp.float32)

    loss_mod = CrossEntropyLoss(n_support)
    loss, acc = loss_mod(x, target_np)
    loss = jax.block_until_ready(loss)
    acc = jax.block_until_ready(acc)

    loss_ref, acc_ref = _reference_loss(x, target_np, n_support)
    assert abs(float(loss) - float(loss_ref)) < 1e-4, (float(loss), float(loss_ref))
    assert abs(float(acc) - float(acc_ref)) < 1e-6, (float(acc), float(acc_ref))

    # Multi-tile / ragged-grid path: nq = 320 -> two 256-query "parallel" tiles,
    # second tile only partially valid (exercises the no-pad + in-kernel mask path).
    n_query_big = 80
    target_big = np.repeat(class_labels, n_support + n_query_big)
    perm_b = np.asarray(
        jax.random.permutation(jax.random.fold_in(key, 3), target_big.size))
    target_big = target_big[perm_b]
    x_big = jax.random.normal(jax.random.fold_in(key, 4),
                              (target_big.size, hidden), dtype=jnp.float32)
    loss_b, acc_b = loss_mod(x_big, target_big)
    loss_b = jax.block_until_ready(loss_b)
    loss_b_ref, acc_b_ref = _reference_loss(x_big, target_big, n_support)
    assert abs(float(loss_b) - float(loss_b_ref)) < 1e-4, (float(loss_b),
                                                           float(loss_b_ref))
    assert abs(float(acc_b) - float(acc_b_ref)) < 1e-6, (float(acc_b),
                                                         float(acc_b_ref))

    # Opt-in bf16-MXU path (halves q-stream HBM traffic; f32 accumulation).
    q_s, p_s, t_s = _episode_split(x, target_np, n_support)
    loss_bf16, acc_bf16 = _proto_ce_pallas(q_s, p_s, t_s, use_bf16_matmul=True)
    loss_bf16 = jax.block_until_ready(loss_bf16)
    assert abs(float(loss_bf16) - float(loss_ref)) < 1e-1, (float(loss_bf16),
                                                            float(loss_ref))
    assert np.isfinite(float(acc_bf16))

    print("KERNEL_OK")
</pallas_src>

<mosaic_0001>
module attributes {stable_mosaic.version = 11 : i64} {
  func.func @_proto_ce_kernel(%arg0: i32, %arg1: memref<12x32xf32, #tpu.memory_space<vmem>>, %arg2: memref<8x32xf32, #tpu.memory_space<vmem>>, %arg3: memref<8x1xf32, #tpu.memory_space<vmem>>, %arg4: memref<1x12xi32, #tpu.memory_space<vmem>>, %arg5: memref<1x1x12xf32, #tpu.memory_space<vmem>>, %arg6: memref<1x1x12xf32, #tpu.memory_space<vmem>>) attributes {dimension_semantics = [#tpu.dimension_semantics<parallel>], iteration_bounds = array<i64: 1>, scalar_prefetch = 0 : i64, scratch_operands = 0 : i64, tpu.core_type = #tpu.core_type<tc>, window_params = [{transform_indices = @transform_0, window_bounds = array<i64: 12, 32>}, {pipeline_mode = #tpu.pipeline_mode<synchronous>, transform_indices = @transform_1, window_bounds = array<i64: 8, 32>}, {pipeline_mode = #tpu.pipeline_mode<synchronous>, transform_indices = @transform_2, window_bounds = array<i64: 8, 1>}, {transform_indices = @transform_3, window_bounds = array<i64: 1, 12>}, {transform_indices = @transform_4, window_bounds = array<i64: 1, 1, 12>}, {transform_indices = @transform_5, window_bounds = array<i64: 1, 1, 12>}]} {
    %c0 = arith.constant 0 : index
    %c0_0 = arith.constant 0 : index
    %0 = vector.load %arg1[%c0, %c0_0] : memref<12x32xf32, #tpu.memory_space<vmem>>, vector<12x32xf32>
    %c0_1 = arith.constant 0 : index
    %c0_2 = arith.constant 0 : index
    %1 = vector.load %arg2[%c0_1, %c0_2] : memref<8x32xf32, #tpu.memory_space<vmem>>, vector<8x32xf32>
    %c0_3 = arith.constant 0 : index
    %c0_4 = arith.constant 0 : index
    %2 = vector.load %arg3[%c0_3, %c0_4] : memref<8x1xf32, #tpu.memory_space<vmem>>, vector<8x1xf32>
    %c0_5 = arith.constant 0 : index
    %c0_6 = arith.constant 0 : index
    %3 = vector.load %arg4[%c0_5, %c0_6] : memref<1x12xi32, #tpu.memory_space<vmem>>, vector<1x12xi32>
    %cst = arith.constant dense<0.000000e+00> : vector<8x12xf32>
    %4 = tpu.matmul %1, %0, %cst {dimension_numbers = #tpu.dot_dimension_numbers<[1], [1], [0], [0], [0, 0, 1, 0], [], []>} : vector<8x32xf32>, vector<12x32xf32>, vector<8x12xf32> -> vector<8x12xf32>
    %5 = vector.broadcast %2 : vector<8x1xf32> to vector<8x12xf32>
    %6 = arith.subf %4, %5 : vector<8x12xf32>
    %7 = tpu.iota {dimensions = array<i32: 0>} : vector<8x12xi32>
    %cst_7 = arith.constant dense<0xFF800000> : vector<12xf32>
    %8 = vector.multi_reduction <maximumf>, %6, %cst_7 [0] : vector<8x12xf32> to vector<12xf32>
    %9 = vector.shape_cast %8 : vector<12xf32> to vector<1x12xf32>
    %10 = vector.broadcast %9 : vector<1x12xf32> to vector<8x12xf32>
    %11 = arith.subf %6, %10 : vector<8x12xf32>
    %12 = math.exp %11 : vector<8x12xf32>
    %cst_8 = arith.constant dense<0.000000e+00> : vector<12xf32>
    %13 = vector.multi_reduction <add>, %12, %cst_8 [0] : vector<8x12xf32> to vector<12xf32>
    %14 = vector.shape_cast %13 : vector<12xf32> to vector<1x12xf32>
    %15 = math.log %14 : vector<1x12xf32>
    %16 = arith.addf %15, %9 : vector<1x12xf32>
    %17 = vector.broadcast %3 : vector<1x12xi32> to vector<8x12xi32>
    %18 = arith.cmpi eq, %7, %17 : vector<8x12xi32>
    %cst_9 = arith.constant 0.000000e+00 : f32
    %19 = vector.broadcast %cst_9 : f32 to vector<8x12xf32>
    %20 = arith.select %18, %6, %19 : vector<8x12xi1>, vector<8x12xf32>
    %cst_10 = arith.constant dense<0.000000e+00> : vector<12xf32>
    %21 = vector.multi_reduction <add>, %20, %cst_10 [0] : vector<8x12xf32> to vector<12xf32>
    %22 = vector.shape_cast %21 : vector<12xf32> to vector<1x12xf32>
    %23 = arith.subf %16, %22 : vector<1x12xf32>
    %24 = vector.broadcast %9 : vector<1x12xf32> to vector<8x12xf32>
    %25 = arith.cmpf oeq, %6, %24 : vector<8x12xf32>
    %c8_i32 = arith.constant 8 : i32
    %26 = vector.broadcast %c8_i32 : i32 to vector<8x12xi32>
    %27 = arith.select %25, %7, %26 : vector<8x12xi1>, vector<8x12xi32>
    %cst_11 = arith.constant dense<2147483647> : vector<12xi32>
    %28 = vector.multi_reduction <minsi>, %27, %cst_11 [0] : vector<8x12xi32> to vector<12xi32>
    %29 = vector.shape_cast %28 : vector<12xi32> to vector<1x12xi32>
    %30 = arith.cmpi eq, %29, %3 : vector<1x12xi32>
    %31 = arith.extui %30 : vector<1x12xi1> to vector<1x12xi32>
    %32 = arith.sitofp %31 : vector<1x12xi32> to vector<1x12xf32>
    %33 = tpu.iota {dimensions = array<i32: 1>} : vector<1x12xi32>
    %c12_i32 = arith.constant 12 : i32
    %34 = arith.muli %arg0, %c12_i32 : i32
    %35 = vector.broadcast %34 : i32 to vector<1x12xi32>
    %36 = arith.addi %33, %35 : vector<1x12xi32>
    %c12_i32_12 = arith.constant 12 : i32
    %37 = vector.broadcast %c12_i32_12 : i32 to vector<1x12xi32>
    %38 = arith.cmpi slt, %36, %37 : vector<1x12xi32>
    %cst_13 = arith.constant 0.000000e+00 : f32
    %39 = vector.broadcast %cst_13 : f32 to vector<1x12xf32>
    %40 = arith.select %38, %23, %39 : vector<1x12xi1>, vector<1x12xf32>
    %41 = vector.shape_cast %40 : vector<1x12xf32> to vector<1x1x12xf32>
    %c0_14 = arith.constant 0 : index
    %c0_15 = arith.constant 0 : index
    %c0_16 = arith.constant 0 : index
    %42 = vector.load %arg5[%c0_14, %c0_15, %c0_16] : memref<1x1x12xf32, #tpu.memory_space<vmem>>, vector<1x1x12xf32>
    tpu.vector_store %arg5[%c0_14, %c0_15, %c0_16], %41 {strides = array<i32>} : memref<1x1x12xf32, #tpu.memory_space<vmem>>, vector<1x1x12xf32>,
    %cst_17 = arith.constant 0.000000e+00 : f32
    %43 = vector.broadcast %cst_17 : f32 to vector<1x12xf32>
    %44 = arith.select %38, %32, %43 : vector<1x12xi1>, vector<1x12xf32>
    %45 = vector.shape_cast %44 : vector<1x12xf32> to vector<1x1x12xf32>
    %c0_18 = arith.constant 0 : index
    %c0_19 = arith.constant 0 : index
    %c0_20 = arith.constant 0 : index
    %46 = vector.load %arg6[%c0_18, %c0_19, %c0_20] : memref<1x1x12xf32, #tpu.memory_space<vmem>>, vector<1x1x12xf32>
    tpu.vector_store %arg6[%c0_18, %c0_19, %c0_20], %45 {strides = array<i32>} : memref<1x1x12xf32, #tpu.memory_space<vmem>>, vector<1x1x12xf32>,
    return
  }
  func.func @transform_0(%arg0: i32) -> (i32, i32) {
    %c0_i32 = arith.constant 0 : i32
    %c0_i32_0 = arith.constant 0 : i32
    return %arg0, %c0_i32 : i32, i32
  }
  func.func @transform_1(%arg0: i32) -> (i32, i32) {
    %c0_i32 = arith.constant 0 : i32
    %c0_i32_0 = arith.constant 0 : i32
    %c0_i32_1 = arith.constant 0 : i32
    return %c0_i32, %c0_i32_0 : i32, i32
  }
  func.func @transform_2(%arg0: i32) -> (i32, i32) {
    %c0_i32 = arith.constant 0 : i32
    %c0_i32_0 = arith.constant 0 : i32
    %c0_i32_1 = arith.constant 0 : i32
    return %c0_i32, %c0_i32_0 : i32, i32
  }
  func.func @transform_3(%arg0: i32) -> (i32, i32) {
    %c0_i32 = arith.constant 0 : i32
    %c0_i32_0 = arith.constant 0 : i32
    return %c0_i32, %arg0 : i32, i32
  }
  func.func @transform_4(%arg0: i32) -> (i32, i32, i32) {
    %c0_i32 = arith.constant 0 : i32
    %c0_i32_0 = arith.constant 0 : i32
    %c0_i32_1 = arith.constant 0 : i32
    return %arg0, %c0_i32, %c0_i32_0 : i32, i32, i32
  }
  func.func @transform_5(%arg0: i32) -> (i32, i32, i32) {
    %c0_i32 = arith.constant 0 : i32
    %c0_i32_0 = arith.constant 0 : i32
    %c0_i32_1 = arith.constant 0 : i32
    return %arg0, %c0_i32, %c0_i32_0 : i32, i32, i32
  }
}

</mosaic_0001>

<bundles_post_ra>
// kernel: _proto_ce_pallas.1
= control target key start
LH: loop header
LB: loop body
LE: loop exit
PB: predicated region body
PF: predicated region fallthrough
CT: control target
= control target key end

     0   :  { %vm24_vm0 = vcmask 261120   ;;  %v203_v0 = vmov 0.0   ;;  %vm204_vm1 = vmmov 0   ;;  %v205_v2 = vmov 0   ;;  %s268_s0 = inlined_call_operand.vmem [shape: f32[12,32], index: 0, kind: input, shape index: {}]   ;;  %s269_s2 = inlined_call_operand.vmem [shape: f32[8,1], index: 2, kind: input, shape index: {}]   ;;  %s270_s1 = inlined_call_operand.vmem [shape: f32[8,32], index: 1, kind: input, shape index: {}]   ;;  %s271_s3 = inlined_call_operand.vmem [shape: s32[1,12], index: 3, kind: input, shape index: {}]   ;;  %s272_s5 = inlined_call_operand.vmem [shape: f32[1,1,12], index: 5, kind: output, shape index: {1}]   ;;  %s273_s4 = inlined_call_operand.vmem [shape: f32[1,1,12], index: 4, kind: output, shape index: {0}]  }
   0x1   :  { %188 = vmatprep.subr.mxu0 %v203_v0  ;;  %v20_v1 = vld [vmem:[%s268_s0 + $0x8] sm:$0xf]  ;;  %192 = vmatprep.mubr.msk.f32.mxu0 %vm204_vm1, %v203_v0  ;;  %v22_v3 = vld [vmem:[%s269_s2] sm:$0xff]  ;;  %vm112_vm2 = vcmask 97280   ;;  %v110_v15 = vlaneseq  ;;  %vm169_vm9 = vcmask 90112  }
   0x2   :  { %189 = vmatpush3.xpose.msk.msra.mxu0 %vm24_vm0, %v20_v1  ;;  %198 = vset.pattern.permute.xlu0 %v205_v2  ;;  %v19_v4 = vld [vmem:[%s268_s0] sm:$0xff] }
   0x3   :  { %190 = vmatprep.subr.mxu0 %v203_v0  ;;  %106 = vperm.xlu0 %198, %v22_v3   ;;  %v21_v5 = vld [vmem:[%s270_s1] sm:$0xff]  ;;  %v111_v18 = vshrl.u32 %v110_v15, 7  ;;  %v163_v28 = vand.u32 127, %v110_v15 }
   0x4   :  { %v23_v29 = vld [vmem:[%s271_s3] sm:$0x1] }
   0x5   :  { %v135_v26 = vsub.s32 0, %v111_v18  ;;  %vm167_vm7 = vcmp.lt.s32.totalorder %v163_v28, 12 }
   0x6   :  { %191 = vmatpush3.xpose.msk.msra.mxu0 %vm24_vm0, %v19_v4 }
   0x7   :  { %v136_v31 = vrot.slane %v23_v29, %v135_v26 }
   0x9   :  { %193 = vmatmul.mubr.msk.f32.vlgmr.msra.gmra.mxu0 %vm24_vm0, %v21_v5  ;;  %vm137_vm10 = vcmp.eq.s32.totalorder %v111_v18, %v136_v31 }
  0x7e   :  { %v107_v6 = vpop.permute.xlu0 %106 }
  0xc9   :  { %v100_v7 = vpop.f32.mrf.mxu0 }
  0xca   :  { %v109_v8 = vsub.f32 %v100_v7, %v107_v6 }
  0xcb   :  { %v194_v9 = vpop.f32.mrf.mxu0 }
  0xcc   :  { %v113_v10 = vsel %vm112_vm2, %v109_v8, -inf  ;;  %v138_v39 = vsel %vm137_vm10, %v109_v8, 0.0 }
  0xcd   :  { %v114_v11 = vrot.slane %v113_v10, 4  ;;  %v139_v41 = vsel %vm112_vm2, %v138_v39, 0.0 }
  0xce   :  { %v140_v44 = vrot.slane %v139_v41, 4 }
  0xcf   :  { %v115_v12 = vmax.f32 %v113_v10, %v114_v11 }
  0xd0   :  { %v141_v46 = vadd.f32 %v140_v44, %v139_v41 }
  0xd1   :  { %v116_v13 = vrot.slane %v115_v12, 2 }
  0xd2   :  { %v142_v47 = vrot.slane %v141_v46, 2 }
  0xd3   :  { %v117_v14 = vmax.f32 %v115_v12, %v116_v13 }
  0xd4   :  { %v143_v48 = vadd.f32 %v142_v47, %v141_v46 }
  0xd5   :  { %v118_v16 = vrot.slane %v117_v14, 1 }
  0xd6   :  { %v144_v49 = vrot.slane %v143_v48, 1 }
  0xd7   :  { %v119_v17 = vmax.f32 %v117_v14, %v118_v16 }
  0xd8   :  { %v145_v53 = vadd.f32 %v144_v49, %v143_v48 }
  0xd9   :  { %v120_v19 = vsub.f32 %v109_v8, %v119_v17  ;;  %vm147_vm3 = vcmp.eq.f32.partialorder %v109_v8, %v119_v17 }
  0xda   :  { %v148_v20 = vsel %vm147_vm3, %v111_v18, 8 }
  0xdb   :  { %v121_v21 = vmul.f32 1.442695, %v120_v19  ;;  %v149_v22 = vsel %vm112_vm2, %v148_v20, 2147483647 }
  0xdc   :  { %v150_v23 = vrot.slane %v149_v22, 4 }
  0xdd   :  { %199 = vpow2.f32 %v121_v21 }
  0xde   :  { %vm151_vm4 = vcmp.lt.s32.totalorder %v149_v22, %v150_v23 }
  0xdf   :  { %v152_v24 = vsel %vm151_vm4, %v149_v22, %v150_v23 }
  0xe0   :  { %v153_v25 = vrot.slane %v152_v24, 2 }
  0xe2   :  { %vm154_vm5 = vcmp.lt.s32.totalorder %v152_v24, %v153_v25 }
  0xe3   :  { %v155_v27 = vsel %vm154_vm5, %v152_v24, %v153_v25 }
  0xe4   :  { %v156_v30 = vrot.slane %v155_v27, 1 }
  0xe6   :  { %vm157_vm6 = vcmp.lt.s32.totalorder %v155_v27, %v156_v30 }
  0xe7   :  { %v158_v32 = vsel %vm157_vm6, %v155_v27, %v156_v30 }
  0xe8   :  { %vm159_vm8 = vcmp.eq.s32.totalorder %v158_v32, %v23_v29 }
  0xe9   :  { %v184_v33 = vsel %vm159_vm8, 1.0, %v203_v0 }
  0xea   :  { %v200_v34 = vpop.eup %199  ;;  %v171_v35 = vsel %vm167_vm7, %v184_v33, 0.0 }
  0xeb   :  { %v123_v36 = vsel %vm112_vm2, %v200_v34, 0.0  ;;  %172 = vst.msk [vmem:[%s272_s5] sm:$0x1] %vm169_vm9, %v171_v35 }
  0xec   :  { %v124_v37 = vrot.slane %v123_v36, 4 }
  0xee   :  { %v125_v38 = vadd.f32 %v124_v37, %v123_v36 }
  0xf0   :  { %v126_v40 = vrot.slane %v125_v38, 2 }
  0xf2   :  { %v127_v42 = vadd.f32 %v126_v40, %v125_v38 }
  0xf4   :  { %v128_v43 = vrot.slane %v127_v42, 1 }
  0xf6   :  { %v129_v45 = vadd.f32 %v128_v43, %v127_v42 }
  0xf8   :  { %201 = vlog2.f32 %v129_v45 }
 0x105   :  { %v202_v50 = vpop.eup %201 }
 0x106   :  { %v131_v51 = vmul.f32 0.6931472, %v202_v50 }
 0x108   :  { %v132_v52 = vadd.f32 %v131_v51, %v119_v17 }
 0x10a   :  { %v146_v54 = vsub.f32 %v132_v52, %v145_v53 }
 0x10c   :  { %v168_v55 = vsel %vm167_vm7, %v146_v54, 0.0 }
 0x10d   :  { %170 = vst.msk [vmem:[%s273_s4] sm:$0x1] %vm169_vm9, %v168_v55 }

</bundles_post_ra>
